<compile_context>
chip_gen: v7x
topology: tpu7x:2x2x1
jax: 0.10.0
libtpu: 0.0.40
codegen_flags: <defaults>
</compile_context>

<pallas_src>
import functools

import jax
import jax.numpy as jnp
from jax import lax
from jax.experimental import pallas as pl
from jax.experimental.pallas import tpu as pltpu


def _gram_diff_kernel(x_ref, t_ref, m_ref, *, cast_operands_bf16):
    """Grid = (split, hw_chunk, batch); batch innermost.

    x_ref, t_ref : (C, chunk) VMEM input tiles (leading batch axis squeezed away)
    m_ref        : (Bt, C, C) f32 output block, resident across the whole (chunk, batch)
                   sub-grid of one split; doubles as the Gram-difference accumulator.
    """
    k = pl.program_id(1)
    b = pl.program_id(2)

    @pl.when(k == 0)
    def _():
        m_ref[b] = jnp.zeros(m_ref.shape[1:], jnp.float32)

    f = x_ref[...]          # kept in the input dtype (MXU-native if bf16)
    t = t_ref[...]
    a = f + t
    d = f - t
    if cast_operands_bf16:  # optional v5e MXU-rate lever; off by default for accuracy
        a = a.astype(jnp.bfloat16)
        d = d.astype(jnp.bfloat16)

    # M_chunk = (F+T)(F-T)^T : contract the last dims of both operands (no transpose).
    m_ref[b] += lax.dot_general(
        a, d,
        dimension_numbers=(((1,), (1,)), ((), ())),
        preferred_element_type=jnp.float32,
    )


def _vmem_capacity_bytes():
    try:
        return int(pltpu.get_tpu_info().vmem_capacity_bytes)
    except Exception:
        return 64 << 20                      # conservative: v7x per-TC VMEM


def _generation_sizing():
    """(input block target bytes, vmem_limit_bytes) per TPU generation."""
    cap = _vmem_capacity_bytes()
    if cap >= (100 << 20):                   # v5e / v6e: 128 MiB physical VMEM
        return 8 << 20, 96 << 20
    return 4 << 20, 56 << 20                 # v7x: 64 MiB per TensorCore


def _round_up(x, m):
    return -(-x // m) * m


def _pick_chunk(C, HW, itemsize, target_bytes):
    """Lane chunk: multiple of 128, one (C, chunk) block ~= target_bytes, preferring a
    chunk that divides HW rounded up to 128 (minimises zero padding)."""
    hw128 = _round_up(HW, 128)
    max_lanes = max(128, (target_bytes // max(C * itemsize, 1)) // 128 * 128)
    if hw128 <= max_lanes:
        return hw128
    lo = max(128, (max_lanes // 2) // 128 * 128)
    for lanes in range(max_lanes, lo - 1, -128):
        if hw128 % lanes == 0:
            return lanes
    return max_lanes                         # wrapper pads HW up to a chunk multiple


def style_loss_forward(x, targets, weight, *, hw_chunk_bytes=None,
                       mxu_bf16_operands=False):
    """Pallas StyleLoss forward.

    x       : (Bx, C, H, W)   (Bx == Bt, or Bx == 1 mirroring G_input.expand_as)
    targets : (Bt, C, H, W)
    Returns (output, loss): output == x (the "clone"), loss is an f32 scalar.
    """
    Bx, C, H, W = x.shape
    Bt, Ct, Ht, Wt = targets.shape
    assert (C, H, W) == (Ct, Ht, Wt), "channel/spatial dims must match"
    assert Bx in (Bt, 1), "G_input.expand_as(G_target) only broadcasts over batch"
    HW = H * W
    itemsize = x.dtype.itemsize

    block_target, vmem_limit = _generation_sizing()
    if hw_chunk_bytes is not None:
        block_target = int(hw_chunk_bytes)

    # Shrink the block target until (double-buffered inputs + resident output block)
    # comfortably fit the per-generation VMEM limit.
    while True:
        chunk = _pick_chunk(C, HW, itemsize, block_target)
        need = 4 * C * chunk * itemsize + 2 * Bt * C * C * 4
        if need <= int(vmem_limit * 0.8) or chunk == 128:
            break
        block_target //= 2

    HW_pad = _round_up(HW, chunk)
    num_k = HW_pad // chunk
    n_split = 2 if (num_k >= 2 and num_k % 2 == 0) else 1   # v7x: one split per TC
    k_per = num_k // n_split

    x_feat = x.reshape(Bx, C, HW)
    t_feat = targets.reshape(Bt, C, HW)
    if HW_pad != HW:
        pad = ((0, 0), (0, 0), (0, HW_pad - HW))
        x_feat = jnp.pad(x_feat, pad)        # zero lanes contribute 0 to the Grams
        t_feat = jnp.pad(t_feat, pad)

    gram_norm = float(C * H * W)
    mse_denom = float(Bt * C * C)
    # true diff = weight * (M + M^T) / (2*gram_norm);  loss = sum(diff^2) / mse_denom
    scale = float(weight) ** 2 / (4.0 * gram_norm * gram_norm * mse_denom)
    # TODO(synk): a traced (jnp) `weight` cannot be folded into the static scale; it
    # would need to be passed as an SMEM scalar instead.

    if Bx == 1:
        x_index = lambda s, k, b: (0, 0, s * k_per + k)   # constant in b -> resident
    else:
        x_index = lambda s, k, b: (b, 0, s * k_per + k)
    t_index = lambda s, k, b: (b, 0, s * k_per + k)
    m_index = lambda s, k, b: (s, 0, 0, 0)                # resident across (k, b)

    kernel = functools.partial(
        _gram_diff_kernel,
        cast_operands_bf16=bool(mxu_bf16_operands) and x.dtype == jnp.float32,
    )

    partial_m = pl.pallas_call(
        kernel,
        out_shape=jax.ShapeDtypeStruct((n_split, Bt, C, C), jnp.float32),
        grid_spec=pltpu.PrefetchScalarGridSpec(
            num_scalar_prefetch=0,
            grid=(n_split, k_per, Bt),
            in_specs=[
                # If an xprof trace shows exposed DMA, sweep pipeline_mode=pl.Buffered(3)
                # on these two specs (re-check the VMEM budget on v7x first).
                pl.BlockSpec((None, C, chunk), x_index),
                pl.BlockSpec((None, C, chunk), t_index),
            ],
            out_specs=pl.BlockSpec((None, Bt, C, C), m_index),
        ),
        compiler_params=pltpu.CompilerParams(
            # split : independent halves of the HW reduction -> parallel (v7x megacore)
            # chunk : reduces into the resident output block -> arbitrary
            # batch : innermost so the Bx==1 x tile stays resident -> arbitrary
            dimension_semantics=("parallel", "arbitrary", "arbitrary"),
            vmem_limit_bytes=vmem_limit,
        ),
    )(x_feat, t_feat)

    # Tiny O(Bt*C^2) epilogue in XLA: combine split partials, symmetrise, square, scale.
    m = jnp.sum(partial_m, axis=0)                     # (Bt, C, C)
    diff = m + jnp.swapaxes(m, -1, -2)                 # == 2 * (F F^T - T T^T)
    loss = jnp.sum(diff * diff) * scale

    # output = input.clone(): arrays are immutable in JAX, return x unchanged.
    return x, loss


def _reference(x, targets, weight):
    Bx, C, H, W = x.shape
    Bt = targets.shape[0]
    f_in = x.reshape(Bx, C, H * W).astype(jnp.float32)
    f_tg = targets.reshape(Bt, C, H * W).astype(jnp.float32)
    g_in = jnp.einsum("bcd,bed->bce", f_in, f_in) / (C * H * W)
    g_tg = jnp.einsum("bcd,bed->bce", f_tg, f_tg) / (C * H * W)
    g_in = jnp.broadcast_to(g_in, g_tg.shape)
    loss = jnp.mean((weight * g_in - weight * g_tg) ** 2)
    return x, loss


if __name__ == "__main__":
    key = jax.random.PRNGKey(0)
    k1, k2 = jax.random.split(key)

    B, C, H, W = 2, 4, 16, 16
    weight = 0.75

    x = jax.random.normal(k1, (B, C, H, W), dtype=jnp.float32)
    targets = jax.random.normal(k2, (B, C, H, W), dtype=jnp.float32)

    ref_out, ref_loss = _reference(x, targets, weight)

    # Default (generation-aware) sizing: single HW chunk at this small shape.
    out, loss = style_loss_forward(x, targets, weight)
    out = jax.block_until_ready(out)
    loss = jax.block_until_ready(loss)
    assert out.shape == x.shape and jnp.allclose(out, ref_out), "output (clone) mismatch"
    assert jnp.allclose(loss, ref_loss, rtol=1e-4, atol=1e-6), (
        f"loss mismatch: {loss} vs {ref_loss}")

    # Force multiple HW chunks: exercises the chunked reduction, the resident
    # output-block accumulator and the 2-way parallel split path.
    out2, loss2 = style_loss_forward(x, targets, weight, hw_chunk_bytes=2048)
    loss2 = jax.block_until_ready(loss2)
    assert jnp.allclose(loss2, ref_loss, rtol=1e-4, atol=1e-6), (
        f"chunked loss mismatch: {loss2} vs {ref_loss}")

    # Bx == 1 broadcast path (x streamed once; its tile stays resident across batch).
    x1 = x[:1]
    ref_out1, ref_loss1 = _reference(x1, targets, weight)
    out3, loss3 = style_loss_forward(x1, targets, weight, hw_chunk_bytes=2048)
    loss3 = jax.block_until_ready(loss3)
    assert jnp.allclose(loss3, ref_loss1, rtol=1e-4, atol=1e-6), (
        f"broadcast loss mismatch: {loss3} vs {ref_loss1}")

    print("KERNEL_OK")
</pallas_src>

<mosaic_0001>
module attributes {stable_mosaic.version = 11 : i64} {
  func.func @_gram_diff_kernel(%arg0: i32, %arg1: i32, %arg2: i32, %arg3: memref<1x4x256xf32, #tpu.memory_space<vmem>>, %arg4: memref<1x4x256xf32, #tpu.memory_space<vmem>>, %arg5: memref<1x2x4x4xf32, #tpu.memory_space<vmem>>) attributes {dimension_semantics = [#tpu.dimension_semantics<parallel>, #tpu.dimension_semantics<arbitrary>, #tpu.dimension_semantics<arbitrary>], iteration_bounds = array<i64: 1, 1, 2>, scalar_prefetch = 0 : i64, scratch_operands = 0 : i64, tpu.core_type = #tpu.core_type<tc>, window_params = [{transform_indices = @transform_0, window_bounds = array<i64: 1, 4, 256>}, {transform_indices = @transform_1, window_bounds = array<i64: 1, 4, 256>}, {transform_indices = @transform_2, window_bounds = array<i64: 1, 2, 4, 4>}]} {
    %c0_i32 = arith.constant 0 : i32
    %0 = arith.cmpi eq, %arg1, %c0_i32 : i32
    %1 = arith.extui %0 : i1 to i32
    %c0_i32_0 = arith.constant 0 : i32
    %2 = arith.cmpi ne, %1, %c0_i32_0 : i32
    scf.if %2 {
      %cst_12 = arith.constant 0.000000e+00 : f32
      %18 = vector.broadcast %cst_12 : f32 to vector<4x4xf32>
      %c0_13 = arith.constant 0 : index
      %19 = arith.index_cast %arg2 : i32 to index
      %c0_14 = arith.constant 0 : index
      %c0_15 = arith.constant 0 : index
      %20 = vector.load %arg5[%c0_13, %19, %c0_14, %c0_15] : memref<1x2x4x4xf32, #tpu.memory_space<vmem>>, vector<1x1x4x4xf32>
      %21 = vector.shape_cast %20 : vector<1x1x4x4xf32> to vector<4x4xf32>
      %22 = vector.shape_cast %18 : vector<4x4xf32> to vector<1x1x4x4xf32>
      tpu.vector_store %arg5[%c0_13, %19, %c0_14, %c0_15], %22 {strides = array<i32>} : memref<1x2x4x4xf32, #tpu.memory_space<vmem>>, vector<1x1x4x4xf32>,
    } else {
    }
    %c0 = arith.constant 0 : index
    %c0_1 = arith.constant 0 : index
    %c0_2 = arith.constant 0 : index
    %3 = vector.load %arg3[%c0, %c0_1, %c0_2] : memref<1x4x256xf32, #tpu.memory_space<vmem>>, vector<1x4x256xf32>
    %4 = vector.shape_cast %3 : vector<1x4x256xf32> to vector<4x256xf32>
    %c0_3 = arith.constant 0 : index
    %c0_4 = arith.constant 0 : index
    %c0_5 = arith.constant 0 : index
    %5 = vector.load %arg4[%c0_3, %c0_4, %c0_5] : memref<1x4x256xf32, #tpu.memory_space<vmem>>, vector<1x4x256xf32>
    %6 = vector.shape_cast %5 : vector<1x4x256xf32> to vector<4x256xf32>
    %7 = arith.addf %4, %6 : vector<4x256xf32>
    %8 = arith.subf %4, %6 : vector<4x256xf32>
    %c0_6 = arith.constant 0 : index
    %9 = arith.index_cast %arg2 : i32 to index
    %c0_7 = arith.constant 0 : index
    %c0_8 = arith.constant 0 : index
    %10 = vector.load %arg5[%c0_6, %9, %c0_7, %c0_8] : memref<1x2x4x4xf32, #tpu.memory_space<vmem>>, vector<1x1x4x4xf32>
    %11 = vector.shape_cast %10 : vector<1x1x4x4xf32> to vector<4x4xf32>
    %cst = arith.constant dense<0.000000e+00> : vector<4x4xf32>
    %12 = tpu.matmul %7, %8, %cst {dimension_numbers = #tpu.dot_dimension_numbers<[1], [1], [0], [0], [0, 0, 1, 0], [], []>} : vector<4x256xf32>, vector<4x256xf32>, vector<4x4xf32> -> vector<4x4xf32>
    %13 = arith.addf %11, %12 : vector<4x4xf32>
    %c0_9 = arith.constant 0 : index
    %14 = arith.index_cast %arg2 : i32 to index
    %c0_10 = arith.constant 0 : index
    %c0_11 = arith.constant 0 : index
    %15 = vector.load %arg5[%c0_9, %14, %c0_10, %c0_11] : memref<1x2x4x4xf32, #tpu.memory_space<vmem>>, vector<1x1x4x4xf32>
    %16 = vector.shape_cast %15 : vector<1x1x4x4xf32> to vector<4x4xf32>
    %17 = vector.shape_cast %13 : vector<4x4xf32> to vector<1x1x4x4xf32>
    tpu.vector_store %arg5[%c0_9, %14, %c0_10, %c0_11], %17 {strides = array<i32>} : memref<1x2x4x4xf32, #tpu.memory_space<vmem>>, vector<1x1x4x4xf32>,
    return
  }
  func.func @transform_0(%arg0: i32, %arg1: i32, %arg2: i32) -> (i32, i32, i32) {
    %c1_i32 = arith.constant 1 : i32
    %0 = arith.muli %arg0, %c1_i32 : i32
    %1 = arith.addi %0, %arg1 : i32
    %c0_i32 = arith.constant 0 : i32
    %c0_i32_0 = arith.constant 0 : i32
    return %arg2, %c0_i32, %1 : i32, i32, i32
  }
  func.func @transform_1(%arg0: i32, %arg1: i32, %arg2: i32) -> (i32, i32, i32) {
    %c1_i32 = arith.constant 1 : i32
    %0 = arith.muli %arg0, %c1_i32 : i32
    %1 = arith.addi %0, %arg1 : i32
    %c0_i32 = arith.constant 0 : i32
    %c0_i32_0 = arith.constant 0 : i32
    return %arg2, %c0_i32, %1 : i32, i32, i32
  }
  func.func @transform_2(%arg0: i32, %arg1: i32, %arg2: i32) -> (i32, i32, i32, i32) {
    %c0_i32 = arith.constant 0 : i32
    %c0_i32_0 = arith.constant 0 : i32
    %c0_i32_1 = arith.constant 0 : i32
    %c0_i32_2 = arith.constant 0 : i32
    return %arg0, %c0_i32, %c0_i32_0, %c0_i32_1 : i32, i32, i32, i32
  }
}

</mosaic_0001>

<bundles_post_ra>
// kernel: tpu_custom_call.1
= control target key start
LH: loop header
LB: loop body
LE: loop exit
PB: predicated region body
PF: predicated region fallthrough
CT: control target
= control target key end

     0   :  { %7 = vsyncpa [#allocation3], 0  ;;  %s890_s0 = inlined_call_operand.hbm [shape: f32[2,4,256], index: 0, kind: input, shape index: {}]   ;;  %s891_s1 = inlined_call_operand.hbm [shape: f32[2,4,256], index: 1, kind: input, shape index: {}]   ;;  %s892_s2 = inlined_call_operand.hbm [shape: f32[1,2,4,4], index: 2, kind: output, shape index: {}]  }
   0x1   :  { %9 = vsyncpa [#allocation3 + $0x1], 0 }
   0x2   :  { %10 = vsyncpa [#allocation6], 0 }
   0x3   :  { %12 = vsyncpa [#allocation6 + $0x1], 0 }
   0x4   :  { %13 = vsyncpa [#allocation4], 0  ;;  %s690_s9 = smov 0   ;;  %s692_s10 = smov 0  }
   0x5   :  { %s694_s11 = smov 0   ;;  %s696_s12 = smov 0  }
   0x6   :  { %s698_s13 = smov 0   ;;  %s700_s14 = smov 0  }
   0x7 LB: > { %s433_s15 = sadd.s32 4294967295, %s667_s14   ;;  %s31_s16 = sadd.s32 1, %s663_s13  ;;  %s667_s14 = sphi %s700_s14, %s19_s14   ;;  %s663_s13 = sphi %s698_s13, %s907_s13   ;;  %s659_s12 = sphi %s696_s12, %s906_s12   ;;  %s655_s11 = sphi %s694_s11, %s905_s11   ;;  %s651_s10 = sphi %s692_s10, %s904_s10   ;;  %s647_s9 = sphi %s690_s9, %s903_s9  }
   0x8   : > { %p32_p0 = scmp.ge.s32.totalorder %s31_s16, 2  ;;  %s49_s17 = sadd.s32 1, %s655_s11 }
   0x9   : > { %p56_p1 = scmp.ne.s32.totalorder %s655_s11, %s651_s10  ;;  %p57_p2 = scmp.eq.s32.totalorder %s667_s14, 0 }
   0xa   : > { %s909_s16 = smov (%p32_p0, %s31_s16), 0  ;;  %p62_p4 = scmp.ne.s32.totalorder %s651_s10, %s647_s9 }
   0xb   : > { %p726_p3 = por %p57_p2, %p56_p1  ;;  %s44_s19 = ssub.s32 %s663_s13, %s909_s16 }
   0xc   : > { %p63_p5 = scmp.eq.s32.totalorder %s433_s15, 0  ;;  %p47_p6 = scmp.eq.s32.totalorder %s44_s19, 0 }
   0xd   : > { %p468_p8 = scmp.lt.s32.totalorder %s667_s14, 2  ;;  %s744_s22 = sand.u32 1, %s655_s11  }
   0xe   : > { %p735_p7 = por %p63_p5, %p62_p4  ;;  %s451_s23 = sshll.u32 %s663_s13, 7 }
   0xf   : > { %s741_s21 = scalar_select %p47_p6, %s655_s11, %s49_s17  }
  0x10   : > { %s895_s20 = scalar_select %p735_p7, 1, 0 }
  0x11   : > { %s436_s24 = sshll.u32 %s744_s22, 3  ;;  %s753_s27 = scalar_lea.hbm %s890_s0, %s451_s23 }
  0x12   : > { %s146_s28 = scalar_lea.vmem [#allocation2], %s436_s24  ;;  %p759_p9 = pnand %p468_p8, %p726_p3 }
  0x13   : > { %s157_s29 = sshll.u32 %s146_s28, 4  ;;  %s143_s3 = scalar_lea.sflag [#allocation3], %s744_s22  ;;  %s763_s29 = int_to_ptr.vmem [resolvable:$true] %s157_s29 }
  0x14   : > { %s523_s4 = scalar_lea.hbm %s753_s27, 128  ;;  %p525_p13 = pneg %p759_p9 }
  0x15   : > { %p524_p12 = scmp.ne.s32.totalorder %s753_s27, %s523_s4  ;;  %s528_s7 = scalar_lea.hbm %s890_s0, 256 }
  0x16   : > { %p529_p2 = scmp.lt.u32.totalorder %s753_s27, %s890_s0  ;;  %p530_p3 = scmp.lt.u32.totalorder %s528_s7, %s523_s4 }
  0x17   : > { %p526_p0 = pnand %p525_p13, %p524_p12  ;;  %p532_p5 = scmp.lt.u32.totalorder %s523_s4, %s753_s27 }
  0x18   : > { %p531_p4 = por %p530_p3, %p529_p2 }
  0x19   : > { %p527_p1 = pneg %p526_p0 }
  0x1a   : > { %p533_p6 = por %p532_p5, %p531_p4 }
  0x1c   : > { %p534_p8 = pnand %p533_p6, %p527_p1 }
  0x1e   : > { %537 = shalt.err (!%p534_p8)
}
  0x1f   : > { %s538_s17 = scalar_lea.vmem %s763_s29, 128  ;;  %s669_s18 = smov [#allocation2]  }
  0x20   : > { %p539_p12 = scmp.ne.s32.totalorder %s763_s29, %s538_s17  ;;  %s543_s19 = sshll.u32 %s669_s18, 4  ;;  %s544_s19 = int_to_ptr.vmem [resolvable:$false] %s543_s19 }
  0x21   : > { %s545_s25 = scalar_lea.vmem %s544_s19, 256  ;;  %p546_p11 = scmp.lt.s32.totalorder %s763_s29, %s544_s19 }
  0x22   : > { %p541_p0 = pnand %p539_p12, %p525_p13  ;;  %p547_p2 = scmp.lt.s32.totalorder %s545_s25, %s538_s17 }
  0x24   : > { %p542_p10 = pneg %p541_p0  ;;  %p548_p3 = por %p547_p2, %p546_p11 }
  0x26   : > { %p549_p4 = pnand %p548_p3, %p542_p10 }
  0x28   : > { %552 = shalt.err (!%p549_p4)
}
  0x29   : > { %464 = dma.hbm_to_vmem [thread:$0]  (!%p759_p9), %s753_s27, 128, %s763_s29, %s143_s3  }
  0x2a   : > { %p897_p1 = scmp.lt.s32.totalorder %s667_s14, 3  ;;  %p898_p5 = scmp.ge.s32.totalorder %s667_s14, 1 }
  0x2b   : > { %s806_s5 = scalar_lea.hbm %s891_s1, %s451_s23  ;;  %s168_s6 = scalar_lea.vmem [#allocation5], %s436_s24 }
  0x2c   : > { %p797_p6 = pnand %p898_p5, %p897_p1  ;;  %s179_s7 = sshll.u32 %s168_s6, 4  ;;  %s180_s7 = int_to_ptr.vmem [resolvable:$true] %s179_s7 }
  0x2d   : > { %s165_s27 = scalar_lea.sflag [#allocation6], %s744_s22  ;;  %s553_s29 = scalar_lea.hbm %s806_s5, 128 }
  0x2e   : > { %s899_s26 = scalar_select %p797_p6, 1, 0 }
  0x2f   : > { %p554_p10 = scmp.ne.s32.totalorder %s806_s5, %s553_s29  ;;  %s558_s23 = scalar_lea.hbm %s891_s1, 256 }
  0x30   : > { %p559_p12 = scmp.lt.u32.totalorder %s806_s5, %s891_s1  ;;  %p560_p0 = scmp.lt.u32.totalorder %s558_s23, %s553_s29 }
  0x31   : > { %p556_p11 = pnand %p554_p10, %p525_p13  ;;  %p562_p3 = scmp.lt.u32.totalorder %s553_s29, %s806_s5 }
  0x32   : > { %p561_p2 = por %p560_p0, %p559_p12 }
  0x33   : > { %p557_p8 = pneg %p556_p11 }
  0x34   : > { %p563_p4 = por %p562_p3, %p561_p2 }
  0x36   : > { %p564_p1 = pnand %p563_p4, %p557_p8 }
  0x38   : > { %567 = shalt.err (!%p564_p1)
}
  0x39   : > { %s568_s22 = scalar_lea.vmem %s180_s7, 128  ;;  %s670_s24 = smov [#allocation5]  }
  0x3a   : > { %p569_p5 = scmp.ne.s32.totalorder %s180_s7, %s568_s22  ;;  %s573_s18 = sshll.u32 %s670_s24, 4  ;;  %s574_s18 = int_to_ptr.vmem [resolvable:$false] %s573_s18 }
  0x3b   : > { %s575_s19 = scalar_lea.vmem %s574_s18, 256  ;;  %p576_p7 = scmp.lt.s32.totalorder %s180_s7, %s574_s18 }
  0x3c   : > { %p571_p10 = pnand %p569_p5, %p525_p13  ;;  %p577_p6 = scmp.lt.s32.totalorder %s575_s19, %s568_s22 }
  0x3e   : > { %p572_p11 = pneg %p571_p10  ;;  %p578_p0 = por %p577_p6, %p576_p7 }
  0x40   : > { %p579_p12 = pnand %p578_p0, %p572_p11 }
  0x42   : > { %582 = shalt.err (!%p579_p12)
}
  0x43   : > { %467 = dma.hbm_to_vmem [thread:$0]  (!%p759_p9), %s806_s5, 128, %s180_s7, %s165_s27  }
  0x44   : > { %p900_p8 = scmp.ne.s32.totalorder %s899_s26, 0 }
  0x45   : > { %s190_s25 = sand.u32 (!%p900_p8), 1, %s651_s10   ;;  %p901_p13 = scmp.ne.s32.totalorder (!%p900_p8), %s895_s20, 0 }
  0x46   : > { %188 = sbr.rel (%p900_p8) target bundleno = 319 (0x13f), region = 28  ;;  %s443_s28 = sshll.u32 (!%p900_p8), %s190_s25, 3 }
  0x47   : > { %s191_s4 = scalar_lea.sflag (!%p900_p8), [#allocation3], %s190_s25  ;;  %s194_s6 = scalar_lea.vmem (!%p900_p8), [#allocation2], %s443_s28 }
  0x4d   : > { %634 = dma.done.wait (%p901_p13), %s191_s4, 128  }
  0x4e   : > { %636 = vsyncadd (%p901_p13), %s191_s4, 4294967168  ;;  %s200_s29 = scalar_lea.sflag [#allocation6], %s190_s25  ;;  %s203_s3 = scalar_lea.vmem [#allocation5], %s443_s28 }
  0x4f   : > { %638 = dma.done.wait (%p901_p13), %s200_s29, 128  }
  0x50   : > { %640 = vsyncadd (%p901_p13), %s200_s29, 4294967168  ;;  %s445_s30 = sshll.u32 %s659_s12, 2  ;;  %vm234_vm0 = vcmask 27648   ;;  %v671_v0 = vmov 0.0   ;;  %v236_v1 = vld [vmem:[%s194_s6] sm:$0xff]  ;;  %v237_v2 = vld [vmem:[%s203_s3] sm:$0xff] }
  0x51   : > { %s233_s26 = scalar_lea.vmem [#allocation7], %s445_s30  ;;  %v239_v3 = vsub.f32 %v236_v1, %v237_v2  ;;  %v238_v4 = vadd.f32 %v237_v2, %v236_v1  ;;  %s672_s20 = smov [#allocation7]  }
  0x52   : > { %235 = vst.msk [vmem:[%s233_s26] sm:$0xf] %vm234_vm0, %v671_v0  ;;  %s331_s5 = sshll.u32 %s672_s20, 4  ;;  %p845_p7 = scmp.eq.s32.totalorder %s433_s15, 1  ;;  %s332_s5 = int_to_ptr.vmem [resolvable:$true] %s331_s5 }
  0x53   : > { %v247_v5 = vcombine.high %v239_v3, %v239_v3  ;;  %v244_v6 = vcombine.high %v238_v4, %v238_v4  ;;  %s583_s7 = scalar_lea.vmem %s332_s5, 128  ;;  %p590_p3 = scmp.lt.s32.totalorder %s332_s5, %s332_s5 }
  0x54   : > { %p584_p9 = scmp.ne.s32.totalorder %s332_s5, %s583_s7  ;;  %p591_p4 = scmp.lt.s32.totalorder %s583_s7, %s583_s7 }
  0x55   : > { %249 = vmatprep.subr.mxu0 %v247_v5  ;;  %313 = vmatprep.mubr.f32.mxu0 %v244_v6 }
  0x56   : > { %250 = vmatpush1.xpose.msra.mxu0 %v239_v3  ;;  %p585_p6 = pnand %p584_p9, %p845_p7  ;;  %p592_p1 = por %p591_p4, %p590_p3 }
  0x58   : > { %p586_p2 = pneg %p585_p6 }
  0x59   : > { %314 = vmatmul.mubr.f32.vlgmr.msra.gmra.mrb[0].mxu0 %v238_v4  ;;  %v242_v7 = vld [vmem:[%s233_s26] sm:$0xf] }
  0x5a   : > { %p593_p5 = pnand %p592_p1, %p586_p2 }
 0x12c   : > { %v315_v8 = vpop.f32.mrb[0].mxu0 }
 0x12d   : > { %v319_v9 = vadd.f32 %v315_v8, %v242_v7  ;;  %v317_v10 = vpop.f32.mrb[1].mxu0 }
 0x12f   : > { %321 = vst.msk [vmem:[%s233_s26] sm:$0xf] %vm234_vm0, %v319_v9 }
 0x130   : > { %596 = shalt.err (!%p593_p5)
}
 0x131   : > { %s597_s8 = scalar_lea.hbm %s892_s2, 128 }
 0x132   : > { %p598_p10 = scmp.ne.s32.totalorder %s892_s2, %s597_s8  ;;  %p603_p12 = scmp.lt.u32.totalorder %s597_s8, %s892_s2 }
 0x134   : > { %p599_p11 = pnand %p598_p10, %p845_p7 }
 0x136   : > { %p600_p0 = pneg %p599_p11 }
 0x138   : > { %p605_p8 = pnand %p603_p12, %p600_p0 }
 0x13a   : > { %608 = shalt.err (!%p605_p8)
}
 0x13b   : > { %s673_s24 = smov 64   ;;  %s674_s18 = smov 4  }
 0x13c   : > { %458 = dma.vmem_to_hbm [thread:$0]  (%p845_p7), %s332_s5, 128, %s892_s2, [#allocation4], %s673_s24, %s673_s24, %s674_s18  }
 0x13d   : > { %642 = dma.done.wait (%p845_p7), [#allocation4], 128  }
 0x13e   : > { %644 = vsyncadd (%p845_p7), [#allocation4], 4294967168 }
 0x13f PF: > { %s19_s14 = sadd.s32 1, %s667_s14   ;;  %s903_s9 = smov %s651_s10 }
 0x140   : > { %p16_p13 = scmp.ge.s32.totalorder %s19_s14, 4   ;;  %s904_s10 = smov %s655_s11 }
 0x141   : > { %s905_s11 = smov %s741_s21  ;;  %s906_s12 = smov %s663_s13 }
 0x142   : > { %s907_s13 = smov %s909_s16  ;;  %18 = sbr.rel (!%p16_p13) target bundleno = 7 (0x7), region = 85 }
 0x149   :  { %347 = vsyncpa [#allocation3], 1 }
 0x14a   :  { %349 = vsyncpa [#allocation3 + $0x1], 1 }
 0x14b   :  { %350 = vsyncpa [#allocation6], 1 }
 0x14c   :  { %352 = vsyncpa [#allocation6 + $0x1], 1 }
 0x14d   :  { %353 = vsyncpa [#allocation4], 1 }
 0x14e   :  { %355 = vsyncpa [#allocation4 + $0x1], 1 }

</bundles_post_ra>
